<compile_context>
chip_gen: v7x
topology: tpu7x:2x2x1
jax: 0.10.0
libtpu: 0.0.40
codegen_flags: <defaults>
</compile_context>

<pallas_src>
import jax
import jax.numpy as jnp
from jax.experimental import pallas as pl
from jax.experimental.pallas import tpu as pltpu

IN_F = 4        # fc1 in_features
IN_PAD = 8      # x / W1^T K-dim padded to a full 8-sublane tile
HID_F = 16      # fc1 out_features / fc2 in_features
OUT_F = 3       # fc2 out_features
LANE = 128      # lane width for the packed parameter slab
SLAB_ROWS = IN_PAD + HID_F   # 24: rows 0:8 = W1^T tile (+b1,b2), rows 8:24 = W2^T tile


def iris_mlp_kernel(x_ref, p_ref, o_ref):
    """o = relu(x @ W1^T + b1) @ W2^T + b2.

    x_ref : (TB, 8)   f32, cols 4:8 must be exactly zero
    p_ref : (24, 128) f32 packed parameter slab (see pack_params):
              rows 0:4  -> W1^T (4,16), cols 16.. zero
              row  4    -> b1   (16,),  cols 16.. zero
              row  5    -> b2   (3,),   cols 3..  zero
              rows 6:8  -> zero
              rows 8:24 -> W2^T (16,3), cols 3.. zero
    o_ref : (TB, 3)   f32
    """
    x = x_ref[...]                                  # (TB, 8)
    # Full aligned (8,128) tile.  Rows 4..7 hold b1/b2/zeros, but x[:, 4:8] == 0,
    # so they contribute exactly 0 to the matmul (finite * 0 == 0).
    w1 = p_ref[0:IN_PAD, :]                         # (8, 128)
    b1 = p_ref[IN_F:IN_F + 1, :]                    # (1, 128)
    b2 = p_ref[IN_F + 1:IN_F + 2, :]                # (1, 128)
    w2 = p_ref[IN_PAD:IN_PAD + HID_F, :]            # (16, 128) aligned tile

    # Layer 1 (MXU, K=8) + bias + ReLU.  Pad lanes of h are exact zeros.
    h = jnp.dot(x, w1, preferred_element_type=jnp.float32) + b1
    h = jnp.maximum(h, 0.0)                         # (TB, 128)

    # Layer 2 (MXU, K=16) + bias.  Only the first 16 lanes of h carry data.
    y = jnp.dot(h[:, :HID_F], w2, preferred_element_type=jnp.float32) + b2

    # Store only the 3 real output columns: no wrapper-side slice / extra
    # dispatch, and only 12 B/row of HBM writeback in the batched regime.
    o_ref[...] = y[:, :OUT_F].astype(o_ref.dtype)


def pack_params(w1, b1, w2, b2):
    """Pack PyTorch-layout params (out, in) into one zero-padded (24,128) slab."""
    slab = jnp.zeros((SLAB_ROWS, LANE), jnp.float32)
    slab = slab.at[0:IN_F, 0:HID_F].set(w1.T.astype(jnp.float32))           # W1^T
    slab = slab.at[IN_F, 0:HID_F].set(b1.astype(jnp.float32))               # b1
    slab = slab.at[IN_F + 1, 0:OUT_F].set(b2.astype(jnp.float32))           # b2
    slab = slab.at[IN_PAD:IN_PAD + HID_F, 0:OUT_F].set(w2.T.astype(jnp.float32))  # W2^T
    return slab


def assert_slab_padding_zero(slab):
    """Guard: results rely on the pad regions of the slab being exactly zero."""
    mask = jnp.zeros((SLAB_ROWS, LANE), bool)
    mask = mask.at[0:IN_F, 0:HID_F].set(True)
    mask = mask.at[IN_F, 0:HID_F].set(True)
    mask = mask.at[IN_F + 1, 0:OUT_F].set(True)
    mask = mask.at[IN_PAD:IN_PAD + HID_F, 0:OUT_F].set(True)
    assert not bool(jnp.any(jnp.where(mask, 0.0, slab) != 0.0))


def iris_forward(x, param_slab, *, block_rows=512):
    """x: (B, 4) f32 (or pre-padded (B, 8) with zero cols 4:8) -> (B, 3) f32."""
    B = x.shape[0]
    if x.shape[1] == IN_F:
        x = jnp.pad(x, ((0, 0), (0, IN_PAD - IN_F)))   # K=8 aligned, pad cols = 0
    assert x.shape[1] == IN_PAD

    if B <= block_rows:
        # Small-batch path: one invocation, whole arrays resident in VMEM,
        # no grid / pipelining machinery.
        return pl.pallas_call(
            iris_mlp_kernel,
            out_shape=jax.ShapeDtypeStruct((B, OUT_F), jnp.float32),
            in_specs=[
                pl.BlockSpec(memory_space=pltpu.MemorySpace.VMEM),
                pl.BlockSpec(memory_space=pltpu.MemorySpace.VMEM),
            ],
            out_specs=pl.BlockSpec(memory_space=pltpu.MemorySpace.VMEM),
        )(x, param_slab)

    # Batched-grid path: pipeline TB-row blocks of x/out, keep the 12 KB
    # parameter slab resident (constant block index), batch axis "parallel"
    # so v7x's two TensorCores split the grid (no-op on v5e/v6e).
    nblk = pl.cdiv(B, block_rows)
    b_pad = nblk * block_rows
    if b_pad != B:
        x = jnp.pad(x, ((0, b_pad - B), (0, 0)))       # extra rows compute junk, sliced off
    y = pl.pallas_call(
        iris_mlp_kernel,
        out_shape=jax.ShapeDtypeStruct((b_pad, OUT_F), jnp.float32),
        grid=(nblk,),
        in_specs=[
            pl.BlockSpec((block_rows, IN_PAD), lambda i: (i, 0)),
            pl.BlockSpec((SLAB_ROWS, LANE), lambda i: (0, 0)),   # fetched once
        ],
        out_specs=pl.BlockSpec((block_rows, OUT_F), lambda i: (i, 0)),
        compiler_params=pltpu.CompilerParams(
            dimension_semantics=("parallel",),
            # TB=512 working set is ~1.5 MiB double-buffered: comfortably under
            # the scoped-VMEM defaults of v5e (16 MiB) / v6e / v7x (32 MiB);
            # pin the limit anyway so the tiling never hits a per-chip cliff.
            vmem_limit_bytes=16 * 1024 * 1024,
        ),
    )(x, param_slab)
    return y[:B] if b_pad != B else y


def init_params(key):
    """Deterministic init mimicking PyTorch nn.Linear (uniform +/-1/sqrt(fan_in))."""
    k1, k2, k3, k4 = jax.random.split(key, 4)
    bound1 = 1.0 / jnp.sqrt(float(IN_F))
    bound2 = 1.0 / jnp.sqrt(float(HID_F))
    w1 = jax.random.uniform(k1, (HID_F, IN_F), jnp.float32, -bound1, bound1)
    b1 = jax.random.uniform(k2, (HID_F,), jnp.float32, -bound1, bound1)
    w2 = jax.random.uniform(k3, (OUT_F, HID_F), jnp.float32, -bound2, bound2)
    b2 = jax.random.uniform(k4, (OUT_F,), jnp.float32, -bound2, bound2)
    return w1, b1, w2, b2


if __name__ == "__main__":
    key = jax.random.PRNGKey(0)
    kx, kb, kp = jax.random.split(key, 3)

    w1, b1, w2, b2 = init_params(kp)
    param_slab = pack_params(w1, b1, w2, b2)   # packed once, reused every call
    assert_slab_padding_zero(param_slab)

    def ref_fwd(xs):
        return jnp.maximum(xs @ w1.T + b1, 0.0) @ w2.T + b2

    fwd = jax.jit(iris_forward)   # fuses the x-pad / row-unpad around the kernel

    # Small-batch (IrisNet inference) regime: single-block path.
    batch = 8
    x = jax.random.normal(kx, (batch, IN_F), dtype=jnp.float32)
    out = jax.block_until_ready(fwd(x, param_slab))
    assert out.shape == (batch, OUT_F)
    assert jnp.allclose(out, ref_fwd(x), atol=3e-5, rtol=1e-5)

    # Batched-grid path, deliberately not a multiple of the block size.
    big_batch = 1000
    xb = jax.random.normal(kb, (big_batch, IN_F), dtype=jnp.float32)
    outb = jax.block_until_ready(fwd(xb, param_slab))
    assert outb.shape == (big_batch, OUT_F)
    assert jnp.allclose(outb, ref_fwd(xb), atol=3e-5, rtol=1e-5)

    print("KERNEL_OK")
</pallas_src>

<mosaic_0001>
module attributes {stable_mosaic.version = 11 : i64} {
  func.func @iris_mlp_kernel(%arg0: memref<8x8xf32, #tpu.memory_space<vmem>>, %arg1: memref<24x128xf32, #tpu.memory_space<vmem>>, %arg2: memref<8x3xf32, #tpu.memory_space<vmem>>) attributes {dimension_semantics = [], scalar_prefetch = 0 : i64, scratch_operands = 0 : i64, tpu.core_type = #tpu.core_type<tc>} {
    %c0 = arith.constant 0 : index
    %c0_0 = arith.constant 0 : index
    %0 = vector.load %arg0[%c0, %c0_0] : memref<8x8xf32, #tpu.memory_space<vmem>>, vector<8x8xf32>
    %c0_1 = arith.constant 0 : index
    %c0_2 = arith.constant 0 : index
    %1 = vector.load %arg1[%c0_1, %c0_2] : memref<24x128xf32, #tpu.memory_space<vmem>>, vector<8x128xf32>
    %c4 = arith.constant 4 : index
    %c0_3 = arith.constant 0 : index
    %2 = vector.load %arg1[%c4, %c0_3] : memref<24x128xf32, #tpu.memory_space<vmem>>, vector<1x128xf32>
    %c5 = arith.constant 5 : index
    %c0_4 = arith.constant 0 : index
    %3 = vector.load %arg1[%c5, %c0_4] : memref<24x128xf32, #tpu.memory_space<vmem>>, vector<1x128xf32>
    %c8 = arith.constant 8 : index
    %c0_5 = arith.constant 0 : index
    %4 = vector.load %arg1[%c8, %c0_5] : memref<24x128xf32, #tpu.memory_space<vmem>>, vector<16x128xf32>
    %cst = arith.constant dense<0.000000e+00> : vector<8x128xf32>
    %5 = tpu.matmul %0, %1, %cst {dimension_numbers = #tpu.dot_dimension_numbers<[1], [0], [0], [1], [0, 0, 1, 1], [], []>} : vector<8x8xf32>, vector<8x128xf32>, vector<8x128xf32> -> vector<8x128xf32>
    %6 = vector.broadcast %2 : vector<1x128xf32> to vector<8x128xf32>
    %7 = arith.addf %5, %6 : vector<8x128xf32>
    %cst_6 = arith.constant 0.000000e+00 : f32
    %8 = vector.broadcast %cst_6 : f32 to vector<8x128xf32>
    %9 = arith.maximumf %7, %8 : vector<8x128xf32>
    %10 = vector.extract_strided_slice %9 {offsets = [0, 0], sizes = [8, 16], strides = [1, 1]} : vector<8x128xf32> to vector<8x16xf32>
    %cst_7 = arith.constant dense<0.000000e+00> : vector<8x128xf32>
    %11 = tpu.matmul %10, %4, %cst_7 {dimension_numbers = #tpu.dot_dimension_numbers<[1], [0], [0], [1], [0, 0, 1, 1], [], []>} : vector<8x16xf32>, vector<16x128xf32>, vector<8x128xf32> -> vector<8x128xf32>
    %12 = vector.broadcast %3 : vector<1x128xf32> to vector<8x128xf32>
    %13 = arith.addf %11, %12 : vector<8x128xf32>
    %14 = vector.extract_strided_slice %13 {offsets = [0, 0], sizes = [8, 3], strides = [1, 1]} : vector<8x128xf32> to vector<8x3xf32>
    %c0_8 = arith.constant 0 : index
    %c0_9 = arith.constant 0 : index
    %15 = vector.load %arg2[%c0_8, %c0_9] : memref<8x3xf32, #tpu.memory_space<vmem>>, vector<8x3xf32>
    tpu.vector_store %arg2[%c0_8, %c0_9], %14 {strides = array<i32>} : memref<8x3xf32, #tpu.memory_space<vmem>>, vector<8x3xf32>,
    return
  }
}

</mosaic_0001>

<bundles_post_ra>
// kernel: iris_forward.1
= control target key start
LH: loop header
LB: loop body
LE: loop exit
PB: predicated region body
PF: predicated region fallthrough
CT: control target
= control target key end

     0   :  { %vm21_vm0 = vcmask 64512   ;;  %v207_v0 = vmov 0.0   ;;  %vm208_vm1 = vmmov 0   ;;  %v209_v6 = vmov 0.0|0.0   ;;  %s246_s1 = inlined_call_operand.vmem [shape: f32[24,128], index: 1, kind: input, shape index: {}]   ;;  %s247_s0 = inlined_call_operand.vmem [shape: f32[8,8], index: 0, kind: input, shape index: {}]   ;;  %s248_s2 = inlined_call_operand.vmem [shape: f32[8,3], index: 2, kind: output, shape index: {}]  }
   0x1   :  { %189 = vmatprep.subr.mxu0 %v207_v0  ;;  %v12_v1 = vld [vmem:[%s246_s1] sm:$0xff]  ;;  %191 = vmatprep.mubr.msk.f32.mxu0 %vm208_vm1, %v207_v0  ;;  %v15_v3 = vld [vmem:[%s246_s1 + $0x8] sm:$0xff]  ;;  %v16_v4 = vld [vmem:[%s246_s1 + $0x10] sm:$0xff]  ;;  %vm100_vm2 = vcmask 130048   ;;  %vm174_vm3 = vcmask 23552  }
   0x2   :  { %v11_v2 = vld [vmem:[%s247_s0] sm:$0xff]  ;;  %190 = vmatpush3.msra.mxu0 %v12_v1  ;;  %198 = vmatprep.mubr.msk.f32.mxu1 %vm208_vm1, %v207_v0  ;;  %v202_v5 = vpack.c.bf16 %v16_v4, %v15_v3 }
   0x3   :  { %192 = vmatmul.mubr.msk.f32.vlgmr.msra.gmra.mrb[0].mxu0 %vm21_vm0, %v11_v2  ;;  %201 = vmatprep.subr.bf16.mxu1 %v209_v6  ;;  %v180_v7 = vld [vmem:[%s246_s1 + $0x4] ss:$0 sm:$0xff]  ;;  %v182_v12 = vld [vmem:[%s246_s1 + $0x5] ss:$0 sm:$0xff] }
   0x4   :  { %203 = vmatpush3.bf16.msra.mxu1 %v202_v5 }
  0xd6   :  { %v91_v8 = vpop.f32.mrb[0].mxu0 }
  0xd7   :  { %v92_v9 = vadd.f32 %v180_v7, %v91_v8  ;;  %v193_v10 = vpop.f32.mrb[1].mxu0 }
  0xd9   :  { %v95_v11 = vmax.f32 %v92_v9, 0.0 }
  0xdb   :  { %199 = vmatmul.mubr.msk.f32.vlgmr.msra.gmra.mrb[0].mxu1 %vm100_vm2, %v95_v11 }
 0x1ae   :  { %v170_v13 = vpop.f32.mrb[0].mxu1 }
 0x1af   :  { %v171_v14 = vadd.f32 %v182_v12, %v170_v13  ;;  %v200_v15 = vpop.f32.mrb[1].mxu1 }
 0x1b1   :  { %175 = vst.msk [vmem:[%s248_s2] sm:$0xff] %vm174_vm3, %v171_v14 }

</bundles_post_ra>
